<compile_context>
chip_gen: v6e
topology: v6e:2x2x1
jax: 0.10.0
libtpu: 0.0.40
codegen_flags: <defaults>
</compile_context>

<pallas_src>
import functools
from typing import List

import jax
import jax.numpy as jnp
from jax.experimental import pallas as pl
from jax.experimental.pallas import tpu as pltpu


def _round_up(x: int, m: int) -> int:
    return ((x + m - 1) // m) * m


def _cdiv(a: int, b: int) -> int:
    return (a + b - 1) // b


def _vmem_capacity_bytes() -> int:
    """Per-core VMEM capacity; conservative fallback = v7x (64 MiB)."""
    try:
        info = pltpu.get_tpu_info()
        cap = getattr(info, "vmem_capacity_bytes", None)
        if cap:
            return int(cap)
    except Exception:
        pass
    return 64 << 20


def _pick_tiling(batch: int, input_dim: int, hidden_units: List[int],
                 embedding_dim: int, x_itemsize: int, w_itemsize: int):
    """Pick (batch_tile, vmem_limit_bytes) for this chip generation.

    Large tiles amortize the ~0.35 us per-grid-step overhead; the tile is
    bounded by the per-core VMEM budget (48 MiB on v7x, ~96 MiB on v5e/v6e)
    after accounting for the VMEM-resident weights and live activations.
    """
    vmem_cap = _vmem_capacity_bytes()
    vmem_limit = min(vmem_cap * 3 // 4, 100 << 20)  # 48 MiB (v7x) / 96 MiB (v5e/v6e)

    widths = list(hidden_units) + [embedding_dim]
    # Resident weight/bias footprint (counted double-buffered, to be safe).
    w_bytes, d_in = 0, input_dim
    for d_out in widths:
        w_bytes += 2 * (d_in * d_out * w_itemsize + d_out * 4)
        d_in = d_out
    max_w = max([input_dim] + widths)
    # Per-batch-row VMEM: double-buffered x tile + out tile + live activations.
    per_row = (2 * input_dim * x_itemsize        # x double buffer
               + 2 * embedding_dim * 4           # f32 out double buffer
               + 3 * max_w * 4                   # live f32 temps (y, h, slack)
               + 2 * max_w * x_itemsize)         # compute-dtype copies
    bt_cap = (vmem_limit - w_bytes - (4 << 20)) // per_row
    bt_cap = max(256, min(8192, (bt_cap // 256) * 256))

    if batch <= 256:
        bt = _round_up(max(batch, 8), 8)         # single small tile
    else:
        # >= 2 roughly equal tiles (keeps both v7x TensorCores busy); tiles a
        # multiple of 256 (full MXU M passes on v6e/v7x, also multiple of 128
        # for v5e).
        n_tiles = max(2, _cdiv(batch, bt_cap))
        if n_tiles % 2:
            n_tiles += 1
        bt = min(bt_cap, _round_up(_cdiv(batch, n_tiles), 256))
    return bt, int(vmem_limit)


# ----------------------------- fused Pallas kernel ------------------------------

def _fcn_fused_kernel(x_ref, *refs, n_layers: int, compute_dtype):
    """Fused MLP forward for one batch tile; all layers stay in VMEM/vregs.

    refs layout: (w0, b0, w1, b1, ..., w_{L-1}, b_{L-1}, o_ref)
      x_ref : (BT, Din)        VMEM (batch tile, compute dtype)
      w_i   : (Din_i, Dout_i)  VMEM (compute dtype, resident across grid steps)
      b_i   : (1, Dout_i)      VMEM (f32, resident across grid steps)
      o_ref : (BT, Dembed)     VMEM (f32)
    """
    w_refs = refs[0:2 * n_layers:2]
    b_refs = refs[1:2 * n_layers:2]
    o_ref = refs[2 * n_layers]

    h = x_ref[...].astype(compute_dtype)        # no-op: wrapper already cast x
    y = None
    for i in range(n_layers):
        # MXU matmul with f32 accumulation; operands already in compute dtype.
        y = jnp.dot(h, w_refs[i][...], preferred_element_type=jnp.float32)
        y = y + b_refs[i][...]                  # f32 bias add (broadcast over rows)
        if i != n_layers - 1:
            y = jnp.tanh(y)                     # f32 tanh on the EUP
            # Dropout (eval mode) == identity.
            h = y.astype(compute_dtype)
    o_ref[...] = y.astype(o_ref.dtype)


# ------------------------------- wrapper -------------------------------

def fcn_forward(params, x: jax.Array, *, compute_dtype=jnp.bfloat16) -> jax.Array:
    """Forward pass: [Linear -> Tanh -> Dropout(identity)]* -> Linear, one pallas_call."""
    batch, input_dim = x.shape
    n_layers = len(params)
    hidden_units = [w.shape[1] for (w, _) in params[:-1]]
    embedding_dim = params[-1][0].shape[1]

    x_itemsize = jnp.dtype(compute_dtype).itemsize
    w_itemsize = x_itemsize
    bt, vmem_limit = _pick_tiling(batch, input_dim, hidden_units, embedding_dim,
                                  x_itemsize, w_itemsize)
    batch_p = _round_up(batch, bt)
    grid = (batch_p // bt,)

    # Cast once in the wrapper (halves the dominant x / weight DMA streams when
    # bf16); pad only the batch dim, never the feature dims.
    x_c = x.astype(compute_dtype)
    if batch_p != batch:
        x_c = jnp.pad(x_c, ((0, batch_p - batch), (0, 0)))

    flat_inputs = [x_c]
    # x tile follows the batch grid; its last dim equals the full array dim
    # (allowed by the (8,128) rule), so no feature padding is streamed.
    in_specs = [pl.BlockSpec((bt, input_dim), lambda i: (i, 0))]

    flops = 0
    transcendentals = 0
    bytes_accessed = x_c.size * x_itemsize
    d_in = input_dim
    for li, (w, b) in enumerate(params):
        d_out = w.shape[1]
        w_c = w.astype(compute_dtype)
        b_c = b.reshape(1, d_out).astype(jnp.float32)
        flat_inputs += [w_c, b_c]
        # Full-array, constant-index blocks: DMA'd once, VMEM-resident across steps.
        in_specs.append(pl.BlockSpec((d_in, d_out), lambda i: (0, 0)))
        in_specs.append(pl.BlockSpec((1, d_out), lambda i: (0, 0)))
        flops += 2 * batch_p * d_in * d_out
        if li != n_layers - 1:
            transcendentals += batch_p * d_out
        bytes_accessed += w_c.size * w_itemsize + b_c.size * 4
        d_in = d_out
    bytes_accessed += batch_p * embedding_dim * 4  # f32 output writeback

    # Output block is the real (bt, embedding_dim) slab: masked stores, but no
    # 128-wide inflation and no wrapper slice pass.
    out_specs = pl.BlockSpec((bt, embedding_dim), lambda i: (i, 0))

    kernel = functools.partial(_fcn_fused_kernel, n_layers=n_layers,
                               compute_dtype=compute_dtype)
    out_p = pl.pallas_call(
        kernel,
        out_shape=jax.ShapeDtypeStruct((batch_p, embedding_dim), jnp.float32),
        grid=grid,
        in_specs=in_specs,
        out_specs=out_specs,
        compiler_params=pltpu.CompilerParams(
            dimension_semantics=("parallel",),   # megacore sharding on v7x
            vmem_limit_bytes=vmem_limit,         # 48 MiB on v7x, ~96 MiB on v5e/v6e
        ),
        cost_estimate=pl.CostEstimate(flops=flops,
                                      transcendentals=transcendentals,
                                      bytes_accessed=bytes_accessed),
    )(*flat_inputs)

    return out_p if batch_p == batch else out_p[:batch]


# ------------------------------- init & reference -------------------------------

def init_fcn_params(key, input_dim: int, embedding_dim: int,
                    n_hidden_layers: int, n_hidden_units: List[int]):
    """Deterministic parameter init mirroring the PyTorch module's layer shapes.

    Weights stored as (in_features, out_features) (transposed vs. PyTorch) so each
    layer is a plain `x @ w + b` on the MXU.
    """
    assert n_hidden_layers != 0
    assert len(n_hidden_units) + 1 == n_hidden_layers
    params = []
    in_dim = input_dim
    for i in range(n_hidden_layers):
        out_dim = embedding_dim if i == n_hidden_layers - 1 else n_hidden_units[i]
        key, kw, kb = jax.random.split(key, 3)
        bound = 1.0 / jnp.sqrt(jnp.float32(in_dim))
        w = jax.random.uniform(kw, (in_dim, out_dim), jnp.float32, -bound, bound)
        b = jax.random.uniform(kb, (out_dim,), jnp.float32, -bound, bound)
        params.append((w, b))
        in_dim = out_dim
    return params


def fcn_forward_ref(params, x: jax.Array) -> jax.Array:
    """Pure-JAX reference for correctness checking."""
    n_layers = len(params)
    h = x
    for i, (w, b) in enumerate(params):
        h = h @ w + b
        if i != n_layers - 1:
            h = jnp.tanh(h)
    return h


# ----------------------------------- main -----------------------------------

if __name__ == "__main__":
    # Config consistent with the module's constructor contract:
    #   n_hidden_layers = 3, len(n_hidden_units) == 2
    input_dim = 32
    embedding_dim = 16
    n_hidden_layers = 3
    n_hidden_units = [64, 48]
    dropout_prob = 0.1  # unused at inference (identity)

    key = jax.random.PRNGKey(0)
    key, kx = jax.random.split(key)
    params = init_fcn_params(key, input_dim, embedding_dim,
                             n_hidden_layers, n_hidden_units)

    fwd_f32 = jax.jit(functools.partial(fcn_forward, compute_dtype=jnp.float32))
    fwd_bf16 = jax.jit(functools.partial(fcn_forward, compute_dtype=jnp.bfloat16))

    # --- small-batch check (single grid step), exact-ish f32 path ---
    batch = 8
    x = jax.random.normal(kx, (batch, input_dim), dtype=jnp.float32)
    ref = fcn_forward_ref(params, x)
    out = jax.block_until_ready(fwd_f32(params, x))
    assert out.shape == (batch, embedding_dim), out.shape
    assert jnp.allclose(out, ref, atol=1e-5, rtol=1e-5), "f32 mismatch vs reference"

    # --- multi-tile check (exercises batch padding + 2-step 'parallel' grid) ---
    key, kx2 = jax.random.split(key)
    batch2 = 300
    x2 = jax.random.normal(kx2, (batch2, input_dim), dtype=jnp.float32)
    ref2 = fcn_forward_ref(params, x2)
    out2 = jax.block_until_ready(fwd_f32(params, x2))
    assert out2.shape == (batch2, embedding_dim), out2.shape
    assert jnp.allclose(out2, ref2, atol=1e-5, rtol=1e-5), "f32 multi-tile mismatch"

    # --- default bf16 streaming path (half the HBM traffic), looser tolerance ---
    out_bf16 = jax.block_until_ready(fwd_bf16(params, x2))
    assert out_bf16.shape == (batch2, embedding_dim), out_bf16.shape
    assert jnp.allclose(out_bf16, ref2, atol=5e-2, rtol=5e-2), "bf16 path mismatch"

    print("KERNEL_OK")
</pallas_src>

<mosaic_0001>
module attributes {stable_mosaic.version = 11 : i64} {
  func.func @_fcn_fused_kernel(%arg0: i32, %arg1: memref<8x32xf32, #tpu.memory_space<vmem>>, %arg2: memref<32x64xf32, #tpu.memory_space<vmem>>, %arg3: memref<1x64xf32, #tpu.memory_space<vmem>>, %arg4: memref<64x48xf32, #tpu.memory_space<vmem>>, %arg5: memref<1x48xf32, #tpu.memory_space<vmem>>, %arg6: memref<48x16xf32, #tpu.memory_space<vmem>>, %arg7: memref<1x16xf32, #tpu.memory_space<vmem>>, %arg8: memref<8x16xf32, #tpu.memory_space<vmem>>) attributes {dimension_semantics = [#tpu.dimension_semantics<parallel>], iteration_bounds = array<i64: 1>, scalar_prefetch = 0 : i64, scratch_operands = 0 : i64, tpu.core_type = #tpu.core_type<tc>, window_params = [{transform_indices = @transform_0, window_bounds = array<i64: 8, 32>}, {pipeline_mode = #tpu.pipeline_mode<synchronous>, transform_indices = @transform_1, window_bounds = array<i64: 32, 64>}, {pipeline_mode = #tpu.pipeline_mode<synchronous>, transform_indices = @transform_2, window_bounds = array<i64: 1, 64>}, {pipeline_mode = #tpu.pipeline_mode<synchronous>, transform_indices = @transform_3, window_bounds = array<i64: 64, 48>}, {pipeline_mode = #tpu.pipeline_mode<synchronous>, transform_indices = @transform_4, window_bounds = array<i64: 1, 48>}, {pipeline_mode = #tpu.pipeline_mode<synchronous>, transform_indices = @transform_5, window_bounds = array<i64: 48, 16>}, {pipeline_mode = #tpu.pipeline_mode<synchronous>, transform_indices = @transform_6, window_bounds = array<i64: 1, 16>}, {transform_indices = @transform_7, window_bounds = array<i64: 8, 16>}]} {
    %c0 = arith.constant 0 : index
    %c0_0 = arith.constant 0 : index
    %0 = vector.load %arg1[%c0, %c0_0] : memref<8x32xf32, #tpu.memory_space<vmem>>, vector<8x32xf32>
    %c0_1 = arith.constant 0 : index
    %c0_2 = arith.constant 0 : index
    %1 = vector.load %arg2[%c0_1, %c0_2] : memref<32x64xf32, #tpu.memory_space<vmem>>, vector<32x64xf32>
    %cst = arith.constant dense<0.000000e+00> : vector<8x64xf32>
    %2 = tpu.matmul %0, %1, %cst {dimension_numbers = #tpu.dot_dimension_numbers<[1], [0], [0], [1], [0, 0, 1, 1], [], []>} : vector<8x32xf32>, vector<32x64xf32>, vector<8x64xf32> -> vector<8x64xf32>
    %c0_3 = arith.constant 0 : index
    %c0_4 = arith.constant 0 : index
    %3 = vector.load %arg3[%c0_3, %c0_4] : memref<1x64xf32, #tpu.memory_space<vmem>>, vector<1x64xf32>
    %4 = vector.broadcast %3 : vector<1x64xf32> to vector<8x64xf32>
    %5 = arith.addf %2, %4 : vector<8x64xf32>
    %6 = math.tanh %5 : vector<8x64xf32>
    %c0_5 = arith.constant 0 : index
    %c0_6 = arith.constant 0 : index
    %7 = vector.load %arg4[%c0_5, %c0_6] : memref<64x48xf32, #tpu.memory_space<vmem>>, vector<64x48xf32>
    %cst_7 = arith.constant dense<0.000000e+00> : vector<8x48xf32>
    %8 = tpu.matmul %6, %7, %cst_7 {dimension_numbers = #tpu.dot_dimension_numbers<[1], [0], [0], [1], [0, 0, 1, 1], [], []>} : vector<8x64xf32>, vector<64x48xf32>, vector<8x48xf32> -> vector<8x48xf32>
    %c0_8 = arith.constant 0 : index
    %c0_9 = arith.constant 0 : index
    %9 = vector.load %arg5[%c0_8, %c0_9] : memref<1x48xf32, #tpu.memory_space<vmem>>, vector<1x48xf32>
    %10 = vector.broadcast %9 : vector<1x48xf32> to vector<8x48xf32>
    %11 = arith.addf %8, %10 : vector<8x48xf32>
    %12 = math.tanh %11 : vector<8x48xf32>
    %c0_10 = arith.constant 0 : index
    %c0_11 = arith.constant 0 : index
    %13 = vector.load %arg6[%c0_10, %c0_11] : memref<48x16xf32, #tpu.memory_space<vmem>>, vector<48x16xf32>
    %cst_12 = arith.constant dense<0.000000e+00> : vector<8x16xf32>
    %14 = tpu.matmul %12, %13, %cst_12 {dimension_numbers = #tpu.dot_dimension_numbers<[1], [0], [0], [1], [0, 0, 1, 1], [], []>} : vector<8x48xf32>, vector<48x16xf32>, vector<8x16xf32> -> vector<8x16xf32>
    %c0_13 = arith.constant 0 : index
    %c0_14 = arith.constant 0 : index
    %15 = vector.load %arg7[%c0_13, %c0_14] : memref<1x16xf32, #tpu.memory_space<vmem>>, vector<1x16xf32>
    %16 = vector.broadcast %15 : vector<1x16xf32> to vector<8x16xf32>
    %17 = arith.addf %14, %16 : vector<8x16xf32>
    %c0_15 = arith.constant 0 : index
    %c0_16 = arith.constant 0 : index
    %18 = vector.load %arg8[%c0_15, %c0_16] : memref<8x16xf32, #tpu.memory_space<vmem>>, vector<8x16xf32>
    tpu.vector_store %arg8[%c0_15, %c0_16], %17 {strides = array<i32>} : memref<8x16xf32, #tpu.memory_space<vmem>>, vector<8x16xf32>,
    return
  }
  func.func @transform_0(%arg0: i32) -> (i32, i32) {
    %c0_i32 = arith.constant 0 : i32
    %c0_i32_0 = arith.constant 0 : i32
    return %arg0, %c0_i32 : i32, i32
  }
  func.func @transform_1(%arg0: i32) -> (i32, i32) {
    %c0_i32 = arith.constant 0 : i32
    %c0_i32_0 = arith.constant 0 : i32
    %c0_i32_1 = arith.constant 0 : i32
    return %c0_i32, %c0_i32_0 : i32, i32
  }
  func.func @transform_2(%arg0: i32) -> (i32, i32) {
    %c0_i32 = arith.constant 0 : i32
    %c0_i32_0 = arith.constant 0 : i32
    %c0_i32_1 = arith.constant 0 : i32
    return %c0_i32, %c0_i32_0 : i32, i32
  }
  func.func @transform_3(%arg0: i32) -> (i32, i32) {
    %c0_i32 = arith.constant 0 : i32
    %c0_i32_0 = arith.constant 0 : i32
    %c0_i32_1 = arith.constant 0 : i32
    return %c0_i32, %c0_i32_0 : i32, i32
  }
  func.func @transform_4(%arg0: i32) -> (i32, i32) {
    %c0_i32 = arith.constant 0 : i32
    %c0_i32_0 = arith.constant 0 : i32
    %c0_i32_1 = arith.constant 0 : i32
    return %c0_i32, %c0_i32_0 : i32, i32
  }
  func.func @transform_5(%arg0: i32) -> (i32, i32) {
    %c0_i32 = arith.constant 0 : i32
    %c0_i32_0 = arith.constant 0 : i32
    %c0_i32_1 = arith.constant 0 : i32
    return %c0_i32, %c0_i32_0 : i32, i32
  }
  func.func @transform_6(%arg0: i32) -> (i32, i32) {
    %c0_i32 = arith.constant 0 : i32
    %c0_i32_0 = arith.constant 0 : i32
    %c0_i32_1 = arith.constant 0 : i32
    return %c0_i32, %c0_i32_0 : i32, i32
  }
  func.func @transform_7(%arg0: i32) -> (i32, i32) {
    %c0_i32 = arith.constant 0 : i32
    %c0_i32_0 = arith.constant 0 : i32
    return %arg0, %c0_i32 : i32, i32
  }
}

</mosaic_0001>

<bundles_post_ra>
// kernel: fcn_forward.1
= control target key start
LH: loop header
LB: loop body
LE: loop exit
PB: predicated region body
PF: predicated region fallthrough
CT: control target
= control target key end

     0   :  { %v408_v1 = vmov 0.0   ;;  %vm409_vm0 = vmmov 0   ;;  %s544_s0 = inlined_call_operand.vmem [shape: f32[8,32], index: 0, kind: input, shape index: {}]   ;;  %s545_s1 = inlined_call_operand.vmem [shape: f32[32,64], index: 1, kind: input, shape index: {}]   ;;  %s546_s2 = inlined_call_operand.vmem [shape: f32[1,64], index: 2, kind: input, shape index: {}]   ;;  %s547_s3 = inlined_call_operand.vmem [shape: f32[64,48], index: 3, kind: input, shape index: {}]   ;;  %s548_s4 = inlined_call_operand.vmem [shape: f32[1,48], index: 4, kind: input, shape index: {}]   ;;  %s549_s5 = inlined_call_operand.vmem [shape: f32[48,16], index: 5, kind: input, shape index: {}]   ;;  %s550_s6 = inlined_call_operand.vmem [shape: f32[1,16], index: 6, kind: input, shape index: {}]   ;;  %s551_s7 = inlined_call_operand.hbm [shape: f32[8,16], index: 7, kind: output, shape index: {}]  }
   0x1   :  { %v31_v0 = vld [vmem:[%s545_s1 + $0x18] sm:$0xff]  ;;  %334 = vmatprep.subr.mxu0 %v408_v1  ;;  %v30_v2 = vld [vmem:[%s545_s1 + $0x10] sm:$0xff]  ;;  %342 = vmatprep.mubr.msk.f32.mxu0 %vm409_vm0, %v408_v1 }
   0x2   :  { %335 = vmatpush3.msra.mxu0 %v31_v0  ;;  %345 = vmatprep.subr.mxu1 %v408_v1 }
   0x3   :  { %12 = vsyncpa [#allocation3], 0  ;;  %336 = vmatprep.subr.mxu0 %v408_v1  ;;  %v29_v3 = vld [vmem:[%s545_s1 + $0x8] sm:$0xff]  ;;  %361 = vmatprep.mubr.msk.f32.mxu1 %vm409_vm0, %v408_v1  ;;  %v28_v4 = vld [vmem:[%s545_s1] sm:$0xff]  ;;  %vm39_vm1 = vcmask 261120   ;;  %vm129_vm2 = vcmask 523264  }
   0x4   :  { %337 = vmatpush3.msra.mxu0 %v30_v2  ;;  %v27_v5 = vld [vmem:[%s544_s0] sm:$0xff]  ;;  %v121_v6 = vld [vmem:[%s547_s3 + $0x38] sm:$0xff]  ;;  %v120_v7 = vld [vmem:[%s547_s3 + $0x30] sm:$0xff]  ;;  %vm217_vm3 = vcmask 392192   ;;  %vm291_vm4 = vcmask 130048  }
   0x5   :  { %338 = vmatprep.subr.mxu0 %v408_v1  ;;  %346 = vmatpush3.msra.mxu1 %v121_v6  ;;  %v119_v8 = vld [vmem:[%s547_s3 + $0x28] sm:$0xff]  ;;  %v118_v9 = vld [vmem:[%s547_s3 + $0x20] sm:$0xff]  ;;  %v117_v10 = vld [vmem:[%s547_s3 + $0x18] sm:$0xff] }
   0x6   :  { %339 = vmatpush3.msra.mxu0 %v29_v3  ;;  %347 = vmatprep.subr.mxu1 %v408_v1  ;;  %v116_v11 = vld [vmem:[%s547_s3 + $0x10] sm:$0xff]  ;;  %v115_v12 = vld [vmem:[%s547_s3 + $0x8] sm:$0xff]  ;;  %v114_v13 = vld [vmem:[%s547_s3] sm:$0xff] }
   0x7   :  { %340 = vmatprep.subr.mxu0 %v408_v1  ;;  %348 = vmatpush3.msra.mxu1 %v120_v7  ;;  %v307_v14 = vld [vmem:[%s546_s2] ss:$0 sm:$0xff]  ;;  %v209_v19 = vld [vmem:[%s549_s5 + $0x28] sm:$0xff]  ;;  %v207_v21 = vld [vmem:[%s549_s5 + $0x18] sm:$0xff] }
   0x8   :  { %341 = vmatpush3.msra.mxu0 %v28_v4  ;;  %349 = vmatprep.subr.mxu1 %v408_v1  ;;  %v208_v20 = vld [vmem:[%s549_s5 + $0x20] sm:$0xff]  ;;  %v206_v22 = vld [vmem:[%s549_s5 + $0x10] sm:$0xff]  ;;  %v205_v23 = vld [vmem:[%s549_s5 + $0x8] sm:$0xff] }
   0x9   :  { %343 = vmatmul.mubr.msk.f32.vlgmr.msra.gmra.mxu0 %vm39_vm1, %v27_v5  ;;  %364 = vmatprep.subr.mxu0 %v408_v1  ;;  %v204_v24 = vld [vmem:[%s549_s5] sm:$0xff]  ;;  %s410_s5 = smov [#allocation2]  }
   0xa   :  { %376 = vmatprep.mubr.msk.f32.mxu0 %vm409_vm0, %v408_v1  ;;  %350 = vmatpush3.msra.mxu1 %v119_v8  ;;  %v309_v25 = vld [vmem:[%s548_s4] ss:$0 sm:$0xff]  ;;  %s299_s16 = sshll.u32 %s410_s5, 4  ;;  %s300_s16 = int_to_ptr.vmem [resolvable:$true] %s299_s16 }
   0xb   :  { %351 = vmatprep.subr.mxu1 %v408_v1  ;;  %365 = vmatpush3.msra.mxu0 %v209_v19  ;;  %v311_v30 = vld [vmem:[%s550_s6] ss:$0 sm:$0xff]  ;;  %s386_s4 = scalar_lea.vmem %s300_s16, 128  ;;  %p391_p1 = scmp.lt.s32.totalorder %s300_s16, %s300_s16 }
   0xc   :  { %352 = vmatpush3.msra.mxu1 %v118_v9  ;;  %366 = vmatprep.subr.mxu0 %v408_v1  ;;  %p387_p0 = scmp.ne.s32.totalorder %s300_s16, %s386_s4  ;;  %p392_p2 = scmp.lt.s32.totalorder %s386_s4, %s386_s4 }
   0xd   :  { %353 = vmatprep.subr.mxu1 %v408_v1  ;;  %367 = vmatpush3.msra.mxu0 %v208_v20 }
   0xe   :  { %354 = vmatpush3.msra.mxu1 %v117_v10  ;;  %368 = vmatprep.subr.mxu0 %v408_v1  ;;  %p393_p3 = por %p392_p2, %p391_p1 }
   0xf   :  { %355 = vmatprep.subr.mxu1 %v408_v1  ;;  %369 = vmatpush3.msra.mxu0 %v207_v21 }
  0x10   :  { %356 = vmatpush3.msra.mxu1 %v116_v11  ;;  %370 = vmatprep.subr.mxu0 %v408_v1  ;;  %p394_p4 = pnand %p393_p3, %p387_p0 }
  0x11   :  { %357 = vmatprep.subr.mxu1 %v408_v1  ;;  %371 = vmatpush3.msra.mxu0 %v206_v22 }
  0x12   :  { %358 = vmatpush3.msra.mxu1 %v115_v12  ;;  %372 = vmatprep.subr.mxu0 %v408_v1 }
  0x13   :  { %359 = vmatprep.subr.mxu1 %v408_v1  ;;  %373 = vmatpush3.msra.mxu0 %v205_v23 }
  0x14   :  { %360 = vmatpush3.msra.mxu1 %v114_v13  ;;  %374 = vmatprep.subr.mxu0 %v408_v1 }
  0x15   :  { %375 = vmatpush3.msra.mxu0 %v204_v24 }
  0xc9   :  { %v109_v15 = vpop.f32.mrf.mxu0 }
  0xca   :  { %v110_v16 = vadd.f32 %v307_v14, %v109_v15 }
  0xcb   :  { %v344_v17 = vpop.f32.mrf.mxu0 }
  0xcc   :  { %382 = vtanh.f32 %v110_v16 }
  0xd9   :  { %v383_v18 = vpop.eup %382 }
  0xda   :  { %362 = vmatmul.mubr.msk.f32.vlgmr.msra.gmra.mxu1 %vm129_vm2, %v383_v18 }
 0x19a   :  { %v199_v26 = vpop.f32.mrf.mxu1 }
 0x19b   :  { %v200_v27 = vadd.f32 %v309_v25, %v199_v26 }
 0x19c   :  { %v363_v28 = vpop.f32.mrf.mxu1 }
 0x19d   :  { %384 = vtanh.f32 %v200_v27 }
 0x1aa   :  { %v385_v29 = vpop.eup %384 }
 0x1ab   :  { %377 = vmatmul.mubr.msk.f32.vlgmr.msra.gmra.mxu0 %vm217_vm3, %v385_v29 }
 0x26b   :  { %v287_v31 = vpop.f32.mrf.mxu0 }
 0x26c   :  { %v288_v32 = vadd.f32 %v311_v30, %v287_v31 }
 0x26d   :  { %v378_v33 = vpop.f32.mrf.mxu0 }
 0x26e   :  { %292 = vst.msk [vmem:[#allocation2] sm:$0xff] %vm291_vm4, %v288_v32 }
 0x26f   :  { %397 = shalt.err (!%p394_p4)
}
 0x270   :  { %302 = dma.vmem_to_hbm [thread:$0]  %s300_s16, 128, %s551_s7, [#allocation3]  }
 0x271   :  { %406 = dma.done.wait [#allocation3], 128  }
 0x272   :  { %407 = vsyncadd [#allocation3], 4294967168 }
 0x273   :  { %306 = vsyncpa [#allocation3], 1 }

</bundles_post_ra>
